<compile_context>
chip_gen: v5e
topology: v5e:2x2
jax: 0.10.0
libtpu: 0.0.40
codegen_flags: <defaults>
</compile_context>

<pallas_src>
import functools
import math

import jax
import jax.numpy as jnp
from jax.experimental import pallas as pl
from jax.experimental.pallas import tpu as pltpu


# --------------------------------------------------------------------------------------
# Small helpers (layout plumbing)
# --------------------------------------------------------------------------------------

_PAD_LOGIT = -30.0  # sigmoid(-30) ~ 9e-14  ->  focal / BCE / dice contribution ~ 0 in f32


def _round_up(n, m):
    return ((n + m - 1) // m) * m


def _cdiv(a, b):
    return -(-a // b)


def _flatten_lane_dense(x, pad_value, row_multiple=8):
    """Flatten to 1-D, pad to a multiple of 128*row_multiple and reshape to (rows, 128).

    Gives full [8 x 128] vreg utilization for pure elementwise+sum kernels; pad values
    are chosen so padded elements contribute ~0 to the reduction.  These arrays are tiny
    compared to the point tensors, so the host-side pad copy is negligible."""
    flat = x.reshape(-1).astype(jnp.float32)
    n = flat.shape[0]
    m = _round_up(max(n, 1), 128 * row_multiple)
    if m != n:
        flat = jnp.concatenate([flat, jnp.full((m - n,), pad_value, jnp.float32)])
    return flat.reshape(m // 128, 128)


def _pick_tile_rows(num_elems, max_rows=2048):
    rows = _round_up(_cdiv(max(num_elems, 1), 128), 8)
    return min(max_rows, rows)


def _vmem_budget():
    """Generation-aware (budget_for_stream_buffers, vmem_limit_bytes).

    budget covers 2 inputs x 2 pipeline buffers for the dice/BCE kernel:
      * 128-MiB VMEM chips (v5e / v6e): 32 MiB of buffers, 40 MiB scoped limit.
      * 64-MiB-per-TC chips (v7x):      16 MiB of buffers, 24 MiB scoped limit.
    """
    try:
        cap = int(pltpu.get_tpu_info().vmem_capacity_bytes)
    except Exception:   # no TPU info available -> conservative default
        cap = 64 * 1024 * 1024
    budget = min(32 * 1024 * 1024, cap // 4)
    limit = min(cap - 8 * 1024 * 1024, budget + 8 * 1024 * 1024)
    return budget, limit


# --------------------------------------------------------------------------------------
# Pallas kernels
# --------------------------------------------------------------------------------------

def _bce_with_logits_2eup(x, p, t):
    # numerically-stable BCE-with-logits using only sigmoid + log (2 EUP ops/elem):
    #   max(x,0) - x*t + log1p(exp(-|x|))  ==  max(x,0) - x*t - log(sigmoid(|x|))
    #   sigmoid(|x|) == where(x >= 0, p, 1 - p)   with p = sigmoid(x)
    return jnp.maximum(x, 0.0) - x * t - jnp.log(jnp.where(x >= 0.0, p, 1.0 - p))


def _dice_bce_sum_kernel(x_ref, t_ref, out_ref, acc_d_ref, acc_b_ref, *,
                         row_len, n_rows, tile_rows, tiles_per_core):
    """Fused per-row dice-sum + BCE-row-mean-sum over a (2, tiles_per_core) grid.

    Grid axis 0 ("parallel") splits row tiles across TensorCores; axis 1 ("arbitrary")
    streams row tiles.  Per-step work accumulates into VMEM (tr,1) scratch vectors; the
    cross-sublane reduce + SMEM store happen only on the last step of each core's loop.
    Rows >= n_rows (ragged tail of the last tile, or a clamped duplicate tile) are
    masked in-kernel, so no host-side row padding copy is needed."""
    c = pl.program_id(0)
    g = pl.program_id(1)

    @pl.when(g == 0)
    def _():
        acc_d_ref[...] = jnp.zeros_like(acc_d_ref)
        acc_b_ref[...] = jnp.zeros_like(acc_b_ref)

    row0 = (c * tiles_per_core + g) * tile_rows
    rows = row0 + jax.lax.broadcasted_iota(jnp.int32, (tile_rows, 1), 0)
    valid = rows < n_rows
    vmask = valid.astype(jnp.float32)

    # select pad values BEFORE any math so stale-buffer garbage can't poison the sums
    x = jnp.where(valid, x_ref[...].astype(jnp.float32), _PAD_LOGIT)
    t = jnp.where(valid, t_ref[...].astype(jnp.float32), 0.0)
    p = jax.nn.sigmoid(x)
    bce = _bce_with_logits_2eup(x, p, t)

    num = 2.0 * jnp.sum(p * t, axis=-1, keepdims=True)
    den = jnp.sum(p, axis=-1, keepdims=True) + jnp.sum(t, axis=-1, keepdims=True)
    dice = 1.0 - (num + 1.0) * pl.reciprocal(den + 1.0, approx=True)
    bce_row = jnp.sum(bce, axis=-1, keepdims=True)

    acc_d_ref[...] += dice * vmask
    acc_b_ref[...] += bce_row * vmask

    @pl.when(g == pl.num_programs(1) - 1)
    def _():
        out_ref[0, 0] = jnp.sum(acc_d_ref[...])
        out_ref[0, 1] = jnp.sum(acc_b_ref[...]) * (1.0 / row_len)


def _focal_sum_kernel(logits_ref, tgt_ref, out_ref, acc_ref, *, alpha, gamma):
    @pl.when(pl.program_id(0) == 0)
    def _():
        acc_ref[...] = jnp.zeros_like(acc_ref)

    x = logits_ref[...].astype(jnp.float32)
    t = tgt_ref[...].astype(jnp.float32)
    p = jax.nn.sigmoid(x)
    ce = _bce_with_logits_2eup(x, p, t)
    p_t = p * t + (1.0 - p) * (1.0 - t)
    if float(gamma) == 2.0:
        mod = (1.0 - p_t) * (1.0 - p_t)
    else:
        mod = (1.0 - p_t) ** gamma
    loss = ce * mod
    if alpha >= 0:
        loss = (alpha * t + (1.0 - alpha) * (1.0 - t)) * loss
    acc_ref[...] += jnp.sum(loss, axis=-1, keepdims=True)

    @pl.when(pl.program_id(0) == pl.num_programs(0) - 1)
    def _():
        out_ref[0, 0] = jnp.sum(acc_ref[...])


def _l1_sum_kernel(a_ref, b_ref, out_ref, acc_ref):
    @pl.when(pl.program_id(0) == 0)
    def _():
        acc_ref[...] = jnp.zeros_like(acc_ref)

    a = a_ref[...].astype(jnp.float32)
    b = b_ref[...].astype(jnp.float32)
    acc_ref[...] += jnp.sum(jnp.abs(a - b), axis=-1, keepdims=True)

    @pl.when(pl.program_id(0) == pl.num_programs(0) - 1)
    def _():
        out_ref[0, 0] = jnp.sum(acc_ref[...])


def _box_l1_giou_kernel(boxes_ref, out_ref, *, n_boxes):
    # packed (8, Npad) block: sublanes 0-3 = src (cx,cy,w,h), 4-7 = tgt; N rides the
    # 128-lane axis.  out[0,0] = L1 sum, out[0,1] = sum(1 - GIoU_diag).  Pad lanes are
    # masked exactly via an in-kernel lane iota, so approx reciprocals cannot leak.
    s = boxes_ref[0:4, :].astype(jnp.float32)
    t = boxes_ref[4:8, :].astype(jnp.float32)
    npad = s.shape[1]
    lane = jax.lax.broadcasted_iota(jnp.int32, (1, npad), 1)
    vmask = (lane < n_boxes).astype(jnp.float32)

    out_ref[0, 0] = jnp.sum(jnp.abs(s - t) * vmask)

    scx, scy, sw, sh = s[0:1, :], s[1:2, :], s[2:3, :], s[3:4, :]
    tcx, tcy, tw, th = t[0:1, :], t[1:2, :], t[2:3, :], t[3:4, :]
    sx1, sy1, sx2, sy2 = scx - 0.5 * sw, scy - 0.5 * sh, scx + 0.5 * sw, scy + 0.5 * sh
    tx1, ty1, tx2, ty2 = tcx - 0.5 * tw, tcy - 0.5 * th, tcx + 0.5 * tw, tcy + 0.5 * th

    area_s = (sx2 - sx1) * (sy2 - sy1)
    area_t = (tx2 - tx1) * (ty2 - ty1)
    iw = jnp.maximum(jnp.minimum(sx2, tx2) - jnp.maximum(sx1, tx1), 0.0)
    ih = jnp.maximum(jnp.minimum(sy2, ty2) - jnp.maximum(sy1, ty1), 0.0)
    inter = iw * ih
    union = area_s + area_t - inter
    iou = inter * pl.reciprocal(jnp.maximum(union, 1e-7), approx=True)
    cw = jnp.maximum(sx2, tx2) - jnp.minimum(sx1, tx1)
    ch = jnp.maximum(sy2, ty2) - jnp.minimum(sy1, ty1)
    area_c = jnp.maximum(cw * ch, 1e-7)
    giou = iou - (area_c - union) * pl.reciprocal(area_c, approx=True)
    out_ref[0, 1] = jnp.sum((1.0 - giou) * vmask)


# --------------------------------------------------------------------------------------
# pallas_call wrappers
# --------------------------------------------------------------------------------------

def _dice_bce_sums(logits2d, targets2d):
    """Fused (dice_sum, bce_rowmean_sum) over (N, P) logits/targets.

    No host-side row padding: the ragged last tile is masked in-kernel.  Tile rows are
    sized from a generation-aware VMEM budget; the leading size-2 "parallel" grid axis
    lets v7x's two TensorCores each reduce half the tiles."""
    x = logits2d.astype(jnp.float32)
    t = targets2d.astype(jnp.float32)
    n, p0 = x.shape

    pc = _round_up(max(p0, 128), 128)
    if pc != p0:   # slow path; never hit for the 12544-point / 256-pixel masks
        x = jnp.concatenate([x, jnp.full((n, pc - p0), _PAD_LOGIT, jnp.float32)], axis=1)
        t = jnp.concatenate([t, jnp.zeros((n, pc - p0), jnp.float32)], axis=1)

    budget, vmem_limit = _vmem_budget()
    if n < 8:
        tr = max(n, 1)                                   # block rows == full array rows
    else:
        tr = max(8, min((budget // (pc * 16)) // 8 * 8,  # 2 inputs x 2 buffers <= budget
                        (n // 8) * 8, 2048))
    nt = _cdiv(n, tr)
    tiles_per_core = _cdiv(nt, 2)

    def _in_map(c, g):
        # clamp so a core's trailing (fully-masked) tile never DMAs out of bounds
        return (jnp.minimum(c * tiles_per_core + g, nt - 1), 0)

    kernel = functools.partial(_dice_bce_sum_kernel, row_len=float(p0), n_rows=n,
                               tile_rows=tr, tiles_per_core=tiles_per_core)
    out = pl.pallas_call(
        kernel,
        out_shape=jax.ShapeDtypeStruct((2, 2), jnp.float32),
        grid=(2, tiles_per_core),
        in_specs=[pl.BlockSpec((tr, pc), _in_map),
                  pl.BlockSpec((tr, pc), _in_map)],
        out_specs=pl.BlockSpec((1, 2), lambda c, g: (c, 0),
                               memory_space=pltpu.MemorySpace.SMEM),
        scratch_shapes=[pltpu.VMEM((tr, 1), jnp.float32),
                        pltpu.VMEM((tr, 1), jnp.float32)],
        compiler_params=pltpu.CompilerParams(
            dimension_semantics=("parallel", "arbitrary"),
            vmem_limit_bytes=int(vmem_limit)),
    )(x, t)
    sums = out[0] + out[1]          # add the two per-core partials
    return sums[0], sums[1]


def _tiled_rowsum_call(kernel, a2d, b2d, tile_rows):
    """Row-tiled, pipelined scalar reduction: (rows,128) x2 -> scalar.  VMEM accumulator
    per step, cross-sublane reduce + SMEM store only on the last step."""
    rows = a2d.shape[0]
    return pl.pallas_call(
        kernel,
        out_shape=jax.ShapeDtypeStruct((1, 1), jnp.float32),
        grid=(rows // tile_rows,),
        in_specs=[pl.BlockSpec((tile_rows, 128), lambda i: (i, 0)),
                  pl.BlockSpec((tile_rows, 128), lambda i: (i, 0))],
        out_specs=pl.BlockSpec((1, 1), lambda i: (0, 0),
                               memory_space=pltpu.MemorySpace.SMEM),
        scratch_shapes=[pltpu.VMEM((tile_rows, 1), jnp.float32)],
        compiler_params=pltpu.CompilerParams(dimension_semantics=("arbitrary",)),
    )(a2d, b2d)[0, 0]


def _focal_sum(logits, onehot, alpha, gamma):
    tr = _pick_tile_rows(int(logits.size))
    x2d = _flatten_lane_dense(logits, _PAD_LOGIT, tr)   # pad logits=-30 / targets=0
    t2d = _flatten_lane_dense(onehot, 0.0, tr)          # contribute 0 to the focal sum
    return _tiled_rowsum_call(
        functools.partial(_focal_sum_kernel, alpha=alpha, gamma=gamma), x2d, t2d, tr)


def _l1_sum(a, b):
    tr = _pick_tile_rows(int(a.size))
    a2d = _flatten_lane_dense(a, 0.0, tr)
    b2d = _flatten_lane_dense(b, 0.0, tr)
    return _tiled_rowsum_call(_l1_sum_kernel, a2d, b2d, tr)


def _box_l1_giou_sums(src_boxes, tgt_boxes):
    n = src_boxes.shape[0]
    np_ = _round_up(max(n, 1), 128)
    packed = jnp.zeros((8, np_), jnp.float32)
    packed = packed.at[0:4, :n].set(src_boxes.astype(jnp.float32).T)
    packed = packed.at[4:8, :n].set(tgt_boxes.astype(jnp.float32).T)
    out = pl.pallas_call(
        functools.partial(_box_l1_giou_kernel, n_boxes=n),
        out_shape=jax.ShapeDtypeStruct((1, 2), jnp.float32),
        in_specs=[pl.BlockSpec(memory_space=pltpu.MemorySpace.VMEM)],
        out_specs=pl.BlockSpec(memory_space=pltpu.MemorySpace.SMEM),
    )(packed)
    return out[0, 0], out[0, 1]


# --------------------------------------------------------------------------------------
# Plain-JAX glue (sampling / interpolation / matching)
# --------------------------------------------------------------------------------------

def calculate_uncertainty(logits):
    assert logits.shape[1] == 1
    return -jnp.abs(logits)


def interpolate_nearest(x, size):
    # x: (N, C, H, W) -> (N, C, h, w), PyTorch mode='nearest' semantics
    _, _, H, W = x.shape
    h, w = size
    rows = jnp.floor(jnp.arange(h) * (H / h)).astype(jnp.int32)
    cols = jnp.floor(jnp.arange(w) * (W / w)).astype(jnp.int32)
    return x[:, :, rows][:, :, :, cols]


def point_sample(img, coords):
    # img: (N, C, H, W), coords: (N, P, 2) in [0, 1] with (x, y) ordering.
    # Matches F.grid_sample(img, 2*coords-1, mode='bilinear', align_corners=False,
    #                       padding_mode='zeros') -> returns (N, C, P).
    # TODO(synk): fuse into the dice/BCE kernel (keep each 16x16 mask VMEM-resident and
    #             build the bilinear weights in-kernel from prefetched coords) to kill
    #             the (N, P) HBM intermediates and the 4x XLA gathers; kept in plain JAX.
    N, C, H, W = img.shape
    x = coords[..., 0] * W - 0.5
    y = coords[..., 1] * H - 0.5
    x0 = jnp.floor(x)
    y0 = jnp.floor(y)
    x1 = x0 + 1.0
    y1 = y0 + 1.0
    wx1 = x - x0
    wx0 = 1.0 - wx1
    wy1 = y - y0
    wy0 = 1.0 - wy1

    def gather(ix, iy):
        valid = (ix >= 0) & (ix < W) & (iy >= 0) & (iy < H)
        ixc = jnp.clip(ix, 0, W - 1).astype(jnp.int32)
        iyc = jnp.clip(iy, 0, H - 1).astype(jnp.int32)
        v = jax.vmap(lambda im, yy, xx: im[:, yy, xx])(img, iyc, ixc)  # (N, C, P)
        return v * valid[:, None, :].astype(img.dtype)

    out = (gather(x0, y0) * (wx0 * wy0)[:, None, :]
           + gather(x1, y0) * (wx1 * wy0)[:, None, :]
           + gather(x0, y1) * (wx0 * wy1)[:, None, :]
           + gather(x1, y1) * (wx1 * wy1)[:, None, :])
    return out


def get_uncertain_point_coords_with_randomness(coarse_logits, uncertainty_func, num_points,
                                               oversample_ratio, importance_sample_ratio, key):
    # TODO(synk): detectron2 random point sampling (rand + grid_sample + top_k gather) has no
    # clean Pallas pattern; implemented in plain JAX glue with a fixed PRNG key.
    num_boxes = coarse_logits.shape[0]
    num_sampled = int(num_points * oversample_ratio)
    k1, k2 = jax.random.split(key)
    point_coords = jax.random.uniform(k1, (num_boxes, num_sampled, 2), dtype=jnp.float32)
    point_logits = point_sample(coarse_logits, point_coords)          # (N, 1, num_sampled)
    point_uncertainties = uncertainty_func(point_logits)
    num_uncertain_points = int(importance_sample_ratio * num_points)
    num_random_points = num_points - num_uncertain_points
    idx = jax.lax.top_k(point_uncertainties[:, 0, :], num_uncertain_points)[1]
    point_coords = jnp.take_along_axis(point_coords, idx[..., None], axis=1)
    if num_random_points > 0:
        rand = jax.random.uniform(k2, (num_boxes, num_random_points, 2), dtype=jnp.float32)
        point_coords = jnp.concatenate([point_coords, rand], axis=1)
    return point_coords


def identity_matcher(outputs, targets):
    # TODO(synk): Hungarian matching (scipy.linear_sum_assignment) has no Pallas equivalent;
    # replaced by a deterministic identity matching (query i <-> target i).
    return [(jnp.arange(t['labels'].shape[0], dtype=jnp.int32),
             jnp.arange(t['labels'].shape[0], dtype=jnp.int32)) for t in targets]


# --------------------------------------------------------------------------------------
# SetCriterion
# --------------------------------------------------------------------------------------

class SetCriterion:
    def __init__(self, num_classes, enc_matcher, dec_matcher, weight_dict, enc_losses,
                 dec_losses, num_ctrl_points, focal_alpha=0.25, focal_gamma=2.0):
        self.num_classes = num_classes
        self.enc_matcher = enc_matcher
        self.dec_matcher = dec_matcher
        self.weight_dict = weight_dict
        self.enc_losses = enc_losses
        self.dec_losses = dec_losses
        self.focal_alpha = focal_alpha
        self.focal_gamma = focal_gamma
        self.num_ctrl_points = num_ctrl_points
        self.mask_weight = 5
        self.reg_weight = 2
        self.class_weight = 4
        self.oversample_ratio = 3.0
        self.importance_sample_ratio = 0.75
        self.num_points = 12544

    # ---- losses -----------------------------------------------------------------

    def loss_labels(self, outputs, targets, indices, num_inst, log=False):
        src_logits = outputs['pred_logits'].astype(jnp.float32)   # (B, Q, [K,] C)
        target_classes = jnp.full(src_logits.shape[:-1], self.num_classes, dtype=jnp.int32)
        for b, (src, tgt) in enumerate(indices):
            if src.shape[0] == 0:
                continue
            lbl = targets[b]['labels'][tgt]
            if target_classes.ndim == 3:   # (B, Q, K): broadcast label across ctrl points
                K = target_classes.shape[-1]
                target_classes = target_classes.at[b, src].set(
                    jnp.broadcast_to(lbl[:, None], (lbl.shape[0], K)))
            else:                          # (B, Q)
                target_classes = target_classes.at[b, src].set(lbl)

        # NOTE: DPText-DETR uses num_classes == 1, so the materialized one-hot is the
        # same size as the int targets; in-kernel iota one-hot only pays off for C >> 1.
        C = src_logits.shape[-1]
        onehot = (target_classes[..., None] == jnp.arange(C)).astype(jnp.float32)

        focal_sum = _focal_sum(src_logits, onehot, self.focal_alpha, self.focal_gamma)

        mid = int(math.prod(src_logits.shape[1:-1]))   # mean over intermediate dims
        focal = focal_sum / mid / num_inst
        loss_ce = self.class_weight * focal * src_logits.shape[1]
        return {'loss_ce': loss_ce}

    def loss_cardinality(self, outputs, targets, indices, num_inst):
        pred_logits = outputs['pred_logits']
        tgt_lengths = jnp.asarray([t['labels'].shape[0] for t in targets], dtype=jnp.float32)
        card_pred = jnp.sum(
            (jnp.argmax(jnp.mean(pred_logits, axis=-2), axis=-1) == 0).astype(jnp.float32), axis=1)
        card_err = jnp.mean(jnp.abs(card_pred - tgt_lengths))
        return {'cardinality_error': card_err}

    def loss_boxes(self, outputs, targets, indices, num_inst):
        src_boxes = jnp.concatenate(
            [outputs['pred_boxes'][b][src] for b, (src, _) in enumerate(indices)], axis=0)
        target_boxes = jnp.concatenate(
            [targets[b]['boxes'][i] for b, (_, i) in enumerate(indices)], axis=0)
        l1_sum, giou_sum = _box_l1_giou_sums(src_boxes, target_boxes)
        return {'loss_bbox': l1_sum / num_inst, 'loss_giou': giou_sum / num_inst}

    def loss_ctrl_points(self, outputs, targets, indices, num_inst):
        src_ctrl = jnp.concatenate(
            [outputs['pred_ctrl_points'][b][s] for b, (s, _) in enumerate(indices)], 0)   # (N,K,2)
        _ = jnp.concatenate(
            [outputs['pred_anchor_points'][b][s] for b, (s, _) in enumerate(indices)], 0)  # unused (parity)
        src_seg = jnp.concatenate(
            [outputs['pred_seg_mask'][b][s] for b, (s, _) in enumerate(indices)], 0)       # (N,Hm,Wm)
        tgt_ctrl = jnp.concatenate(
            [targets[b]['ctrl_points'][i] for b, (_, i) in enumerate(indices)], 0)
        tgt_seg = jnp.concatenate(
            [targets[b]['segmentation_map'][i] for b, (_, i) in enumerate(indices)], 0)    # (N,Ht,Wt)

        Hm, Wm = src_seg.shape[-2:]
        tgt_seg = interpolate_nearest(tgt_seg[:, None], (Hm, Wm))[:, 0]

        key = jax.random.PRNGKey(42)   # deterministic replacement for torch.rand
        point_coords = get_uncertain_point_coords_with_randomness(
            src_seg[:, None].astype(jnp.float32), calculate_uncertainty, self.num_points,
            self.oversample_ratio, self.importance_sample_ratio, key)
        point_labels = point_sample(tgt_seg[:, None].astype(jnp.float32), point_coords)[:, 0]  # (N,P)
        point_logits = point_sample(src_seg[:, None].astype(jnp.float32), point_coords)[:, 0]  # (N,P)

        # one fused pass over the largest tensors in the whole criterion
        dice_sum, bce_sum = _dice_bce_sums(point_logits, point_labels)
        loss_dice = dice_sum * self.mask_weight
        loss_mask_ce = bce_sum * self.mask_weight

        l1_sum = _l1_sum(src_ctrl, tgt_ctrl)
        loss_ctrl_points = self.reg_weight * l1_sum
        return {'loss_ctrl_points': loss_ctrl_points / num_inst,
                'loss_anchor_weights_map_dice': loss_dice / num_inst,
                'loss_anchor_weights_map_ce': loss_mask_ce / num_inst}

    def loss_semantic_seg(self, outputs, targets, indices, num_inst):
        tgt = jnp.stack([jnp.sum(t['segmentation_map'], axis=0) for t in targets])   # (B,Ht,Wt)
        sem = outputs['semantic_seg_mask'].astype(jnp.float32)                        # (B,1,h,w)
        b, _, h, w = sem.shape
        tgt = interpolate_nearest(tgt[:, None], (h, w))[:, 0]
        tgt = jnp.clip(tgt, 0.0, 1.0)

        sem2 = sem.reshape(b, -1)
        tgt2 = tgt.reshape(b, -1).astype(jnp.float32)
        dice_sum, bce_sum = _dice_bce_sums(sem2, tgt2)   # fused, single pass
        loss_dice = dice_sum * self.mask_weight / b
        loss_ce = bce_sum * self.mask_weight / b
        return {'loss_semantic_seg_dice': loss_dice, 'loss_semantic_seg_ce': loss_ce}

    # ---- dispatch / forward ------------------------------------------------------

    def get_loss(self, loss, outputs, targets, indices, num_inst, **kwargs):
        loss_map = {'labels': self.loss_labels, 'cardinality': self.loss_cardinality,
                    'ctrl_points': self.loss_ctrl_points, 'boxes': self.loss_boxes}
        return loss_map[loss](outputs, targets, indices, num_inst, **kwargs)

    def forward(self, outputs, targets, gt_instances=None):
        outputs_without_aux = {k: v for k, v in outputs.items()
                               if k != 'aux_outputs' and k != 'enc_outputs'}
        indices = self.dec_matcher(outputs_without_aux, targets)
        num_inst = sum(int(t['ctrl_points'].shape[0]) for t in targets)
        num_inst = max(float(num_inst), 1.0)   # single host, world size 1

        losses = {}
        for loss in self.dec_losses:
            losses.update(self.get_loss(loss, outputs, targets, indices, num_inst))
        losses.update(self.loss_semantic_seg(outputs, targets, indices, num_inst))

        # TODO(synk): stack aux decoder layers along a leading axis and run one gridded
        #             pallas_call per loss type to amortize launch overhead (per review).
        if 'aux_outputs' in outputs:
            for i, aux_outputs in enumerate(outputs['aux_outputs']):
                indices = self.dec_matcher(aux_outputs, targets)
                for loss in self.dec_losses:
                    l_dict = self.get_loss(loss, aux_outputs, targets, indices, num_inst)
                    losses.update({k + f'_{i}': v for k, v in l_dict.items()})

        if 'enc_outputs' in outputs:
            enc_outputs = outputs['enc_outputs']
            indices = self.enc_matcher(enc_outputs, targets)
            for loss in self.enc_losses:
                l_dict = self.get_loss(loss, enc_outputs, targets, indices, num_inst)
                losses.update({k + '_enc': v for k, v in l_dict.items()})
        return losses

    __call__ = forward


# --------------------------------------------------------------------------------------
# Demo
# --------------------------------------------------------------------------------------

if __name__ == "__main__":
    key = jax.random.PRNGKey(0)
    ks = jax.random.split(key, 16)

    B, Q, K, C = 2, 8, 4, 1        # batch, queries, ctrl points, num_classes
    Hm = Wm = 16                   # predicted per-query seg mask size
    Hs = Ws = 16                   # semantic seg mask size
    Ht = Wt = 32                   # target segmentation map size
    n_tgt = [2, 1]                 # instances per image

    outputs = {
        'pred_logits': jax.random.normal(ks[0], (B, Q, K, C), jnp.float32),
        'pred_ctrl_points': jax.random.uniform(ks[1], (B, Q, K, 2), jnp.float32),
        'pred_anchor_points': jax.random.uniform(ks[2], (B, Q, 2), jnp.float32),
        'pred_seg_mask': jax.random.normal(ks[3], (B, Q, Hm, Wm), jnp.float32),
        'semantic_seg_mask': jax.random.normal(ks[4], (B, 1, Hs, Ws), jnp.float32),
        'enc_outputs': {
            'pred_logits': jax.random.normal(ks[5], (B, Q, C), jnp.float32),
            'pred_boxes': jnp.concatenate(
                [0.3 + 0.4 * jax.random.uniform(ks[6], (B, Q, 2), jnp.float32),
                 0.1 + 0.2 * jax.random.uniform(ks[7], (B, Q, 2), jnp.float32)], axis=-1),
        },
    }

    targets = []
    for b in range(B):
        n = n_tgt[b]
        kk = jax.random.split(ks[8 + b], 4)
        targets.append({
            'labels': jnp.zeros((n,), jnp.int32),
            'ctrl_points': jax.random.uniform(kk[0], (n, K, 2), jnp.float32),
            'boxes': jnp.concatenate(
                [0.3 + 0.4 * jax.random.uniform(kk[1], (n, 2), jnp.float32),
                 0.1 + 0.2 * jax.random.uniform(kk[2], (n, 2), jnp.float32)], axis=-1),
            'segmentation_map': (jax.random.uniform(kk[3], (n, Ht, Wt)) < 0.5).astype(jnp.float32),
        })

    criterion = SetCriterion(
        num_classes=C,
        enc_matcher=identity_matcher,
        dec_matcher=identity_matcher,
        weight_dict={'loss_ce': 1.0, 'loss_ctrl_points': 1.0, 'loss_bbox': 1.0, 'loss_giou': 1.0},
        enc_losses=['labels', 'boxes'],
        dec_losses=['labels', 'ctrl_points'],
        num_ctrl_points=K,
    )

    losses = criterion(outputs, targets, gt_instances=None)
    losses = {k: jax.block_until_ready(v) for k, v in losses.items()}
    for v in losses.values():
        assert jnp.isfinite(jnp.asarray(v)).all()
    print("KERNEL_OK")
</pallas_src>

<mosaic_0001>
module attributes {stable_mosaic.version = 11 : i64} {
  func.func @_focal_sum_kernel(%arg0: i32, %arg1: memref<8x128xf32, #tpu.memory_space<vmem>>, %arg2: memref<8x128xf32, #tpu.memory_space<vmem>>, %arg3: memref<1x1xf32, #tpu.memory_space<smem>>, %arg4: memref<8x1xf32, #tpu.memory_space<vmem>>) attributes {dimension_semantics = [#tpu.dimension_semantics<arbitrary>], iteration_bounds = array<i64: 1>, scalar_prefetch = 0 : i64, scratch_operands = 1 : i64, tpu.core_type = #tpu.core_type<tc>, window_params = [{transform_indices = @transform_0, window_bounds = array<i64: 8, 128>}, {transform_indices = @transform_1, window_bounds = array<i64: 8, 128>}, {transform_indices = @transform_2, window_bounds = array<i64: 1, 1>}]} {
    %c0_i32 = arith.constant 0 : i32
    %0 = arith.cmpi eq, %arg0, %c0_i32 : i32
    %1 = arith.extui %0 : i1 to i32
    %c0_i32_0 = arith.constant 0 : i32
    %2 = arith.cmpi ne, %1, %c0_i32_0 : i32
    scf.if %2 {
      %cst_21 = arith.constant 0.000000e+00 : f32
      %50 = vector.broadcast %cst_21 : f32 to vector<8x1xf32>
      %c0_22 = arith.constant 0 : index
      %c0_23 = arith.constant 0 : index
      %51 = vector.load %arg4[%c0_22, %c0_23] : memref<8x1xf32, #tpu.memory_space<vmem>>, vector<8x1xf32>
      tpu.vector_store %arg4[%c0_22, %c0_23], %50 {strides = array<i32>} : memref<8x1xf32, #tpu.memory_space<vmem>>, vector<8x1xf32>,
    } else {
    }
    %c0 = arith.constant 0 : index
    %c0_1 = arith.constant 0 : index
    %3 = vector.load %arg1[%c0, %c0_1] : memref<8x128xf32, #tpu.memory_space<vmem>>, vector<8x128xf32>
    %c0_2 = arith.constant 0 : index
    %c0_3 = arith.constant 0 : index
    %4 = vector.load %arg2[%c0_2, %c0_3] : memref<8x128xf32, #tpu.memory_space<vmem>>, vector<8x128xf32>
    %5 = arith.negf %3 : vector<8x128xf32>
    %6 = math.exp %5 : vector<8x128xf32>
    %cst = arith.constant 1.000000e+00 : f32
    %7 = vector.broadcast %cst : f32 to vector<8x128xf32>
    %8 = arith.addf %7, %6 : vector<8x128xf32>
    %9 = arith.divf %7, %8 : vector<8x128xf32>
    %cst_4 = arith.constant 0.000000e+00 : f32
    %10 = vector.broadcast %cst_4 : f32 to vector<8x128xf32>
    %11 = arith.maximumf %3, %10 : vector<8x128xf32>
    %12 = arith.mulf %3, %4 : vector<8x128xf32>
    %13 = arith.subf %11, %12 : vector<8x128xf32>
    %cst_5 = arith.constant 0.000000e+00 : f32
    %14 = vector.broadcast %cst_5 : f32 to vector<8x128xf32>
    %15 = arith.cmpf oge, %3, %14 : vector<8x128xf32>
    %cst_6 = arith.constant 1.000000e+00 : f32
    %16 = vector.broadcast %cst_6 : f32 to vector<8x128xf32>
    %17 = arith.subf %16, %9 : vector<8x128xf32>
    %18 = arith.select %15, %9, %17 : vector<8x128xi1>, vector<8x128xf32>
    %19 = math.log %18 : vector<8x128xf32>
    %20 = arith.subf %13, %19 : vector<8x128xf32>
    %21 = arith.mulf %9, %4 : vector<8x128xf32>
    %cst_7 = arith.constant 1.000000e+00 : f32
    %22 = vector.broadcast %cst_7 : f32 to vector<8x128xf32>
    %23 = arith.subf %22, %9 : vector<8x128xf32>
    %cst_8 = arith.constant 1.000000e+00 : f32
    %24 = vector.broadcast %cst_8 : f32 to vector<8x128xf32>
    %25 = arith.subf %24, %4 : vector<8x128xf32>
    %26 = arith.mulf %23, %25 : vector<8x128xf32>
    %27 = arith.addf %21, %26 : vector<8x128xf32>
    %cst_9 = arith.constant 1.000000e+00 : f32
    %28 = vector.broadcast %cst_9 : f32 to vector<8x128xf32>
    %29 = arith.subf %28, %27 : vector<8x128xf32>
    %cst_10 = arith.constant 1.000000e+00 : f32
    %30 = vector.broadcast %cst_10 : f32 to vector<8x128xf32>
    %31 = arith.subf %30, %27 : vector<8x128xf32>
    %32 = arith.mulf %29, %31 : vector<8x128xf32>
    %33 = arith.mulf %20, %32 : vector<8x128xf32>
    %cst_11 = arith.constant 2.500000e-01 : f32
    %34 = vector.broadcast %cst_11 : f32 to vector<8x128xf32>
    %35 = arith.mulf %34, %4 : vector<8x128xf32>
    %cst_12 = arith.constant 1.000000e+00 : f32
    %36 = vector.broadcast %cst_12 : f32 to vector<8x128xf32>
    %37 = arith.subf %36, %4 : vector<8x128xf32>
    %cst_13 = arith.constant 7.500000e-01 : f32
    %38 = vector.broadcast %cst_13 : f32 to vector<8x128xf32>
    %39 = arith.mulf %38, %37 : vector<8x128xf32>
    %40 = arith.addf %35, %39 : vector<8x128xf32>
    %41 = arith.mulf %40, %33 : vector<8x128xf32>
    %c0_14 = arith.constant 0 : index
    %c0_15 = arith.constant 0 : index
    %42 = vector.load %arg4[%c0_14, %c0_15] : memref<8x1xf32, #tpu.memory_space<vmem>>, vector<8x1xf32>
    %cst_16 = arith.constant dense<0.000000e+00> : vector<8xf32>
    %43 = vector.multi_reduction <add>, %41, %cst_16 [1] : vector<8x128xf32> to vector<8xf32>
    %44 = vector.shape_cast %43 : vector<8xf32> to vector<8x1xf32>
    %45 = arith.addf %42, %44 : vector<8x1xf32>
    %c0_17 = arith.constant 0 : index
    %c0_18 = arith.constant 0 : index
    %46 = vector.load %arg4[%c0_17, %c0_18] : memref<8x1xf32, #tpu.memory_space<vmem>>, vector<8x1xf32>
    tpu.vector_store %arg4[%c0_17, %c0_18], %45 {strides = array<i32>} : memref<8x1xf32, #tpu.memory_space<vmem>>, vector<8x1xf32>,
    %c0_i32_19 = arith.constant 0 : i32
    %47 = arith.cmpi eq, %arg0, %c0_i32_19 : i32
    %48 = arith.extui %47 : i1 to i32
    %c0_i32_20 = arith.constant 0 : i32
    %49 = arith.cmpi ne, %48, %c0_i32_20 : i32
    scf.if %49 {
      %c0_21 = arith.constant 0 : index
      %c0_22 = arith.constant 0 : index
      %50 = vector.load %arg4[%c0_21, %c0_22] : memref<8x1xf32, #tpu.memory_space<vmem>>, vector<8x1xf32>
      %51 = vector.shape_cast %50 : vector<8x1xf32> to vector<1x8x1xf32>
      %cst_23 = arith.constant dense<0.000000e+00> : vector<1xf32>
      %52 = vector.multi_reduction <add>, %51, %cst_23 [1, 2] : vector<1x8x1xf32> to vector<1xf32>
      %53 = vector.shape_cast %52 : vector<1xf32> to vector<1x1x1xf32>
      %54 = vector.extract %53[0, 0, 0] : f32 from vector<1x1x1xf32>
      %c0_24 = arith.constant 0 : index
      %c0_25 = arith.constant 0 : index
      %55 = memref.load %arg3[%c0_24, %c0_25] : memref<1x1xf32, #tpu.memory_space<smem>>
      memref.store %54, %arg3[%c0_24, %c0_25] : memref<1x1xf32, #tpu.memory_space<smem>>
    } else {
    }
    return
  }
  func.func @transform_0(%arg0: i32) -> (i32, i32) {
    %c0_i32 = arith.constant 0 : i32
    %c0_i32_0 = arith.constant 0 : i32
    return %arg0, %c0_i32 : i32, i32
  }
  func.func @transform_1(%arg0: i32) -> (i32, i32) {
    %c0_i32 = arith.constant 0 : i32
    %c0_i32_0 = arith.constant 0 : i32
    return %arg0, %c0_i32 : i32, i32
  }
  func.func @transform_2(%arg0: i32) -> (i32, i32) {
    %c0_i32 = arith.constant 0 : i32
    %c0_i32_0 = arith.constant 0 : i32
    %c0_i32_1 = arith.constant 0 : i32
    return %c0_i32, %c0_i32_0 : i32, i32
  }
}

</mosaic_0001>

<bundles_post_ra>
// kernel: tpu_custom_call.1
= control target key start
LH: loop header
LB: loop body
LE: loop exit
PB: predicated region body
PF: predicated region fallthrough
CT: control target
= control target key end

     0   :  { %7 = vsyncpa [#allocation4], 0  ;;  %s236_s0 = inlined_call_operand.hbm [shape: f32[8,128], index: 0, kind: input, shape index: {}]   ;;  %s237_s1 = inlined_call_operand.hbm [shape: f32[8,128], index: 1, kind: input, shape index: {}]   ;;  %s238_s2 = inlined_call_operand.hbm [shape: f32[1,1], index: 2, kind: output, shape index: {}]  }
   0x1   :  { %8 = vsyncpa [#allocation7], 0 }
   0x2   :  { %9 = vsyncpa [#allocation5], 0  ;;  %s15_s11 = sshll.u32 %s236_s0, 4  ;;  %s205_s12 = smov [#allocation3]   ;;  %s16_s11 = int_to_ptr.hbm [resolvable:$true] %s15_s11 }
   0x3   :  { %s17_s13 = sshll.u32 %s205_s12, 4  ;;  %s26_s16 = sshll.u32 %s237_s1, 4  ;;  %s18_s13 = int_to_ptr.vmem [resolvable:$true] %s17_s13  ;;  %s27_s16 = int_to_ptr.hbm [resolvable:$true] %s26_s16 }
   0x4   :  { %20 = dma.hbm_to_vmem [thread:$0]  %s16_s11, 128, %s18_s13, [#allocation4]  }
   0x5   :  { %s206_s17 = smov [#allocation6]  }
   0x6   :  { %s28_s18 = sshll.u32 %s206_s17, 4  ;;  %s29_s18 = int_to_ptr.vmem [resolvable:$true] %s28_s18 }
   0x7   :  { %31 = dma.hbm_to_vmem [thread:$0]  %s27_s16, 128, %s29_s18, [#allocation7]  }
   0x8   :  { %199 = dma.done.wait [#allocation4], 128  }
   0x9   :  { %200 = vsyncadd [#allocation4], 4294967168 }
   0xa   :  { %201 = dma.done.wait [#allocation7], 128  }
   0xb   :  { %202 = vsyncadd [#allocation7], 4294967168  ;;  %v46_v0 = vld [vmem:[#allocation3] sm:$0xff]  ;;  %vm44_vm0 = vcmask 7168   ;;  %v207_v4 = vmov 0.0   ;;  %v47_v11 = vld [vmem:[#allocation6] sm:$0xff] }
   0xc   :  { %v126_v1 = vmul.f32 -1.442695, %v46_v0  ;;  %45 = vst.msk [vmem:[#allocation2] sm:$0xff] %vm44_vm0, %v207_v4  ;;  %v77_v15 = vsub.f32 1.0, %v47_v11  ;;  %vm70_vm5 = vcmp.ge.f32.partialorder %v46_v0, 0.0  ;;  %v67_v21 = vmax.f32 %v46_v0, 0.0 }
   0xd   :  { %v68_v22 = vmul.f32 %v47_v11, %v46_v0  ;;  %v83_v26 = vmul.f32 0.25, %v47_v11  ;;  %s114_s19 = sshll.u32 %s238_s2, 4  ;;  %s208_s21 = smov [#allocation8]   ;;  %s115_s19 = int_to_ptr.hbm [resolvable:$true] %s114_s19 }
   0xe   :  { %133 = vpow2.f32 %v126_v1  ;;  %v84_v27 = vmul.f32 0.75, %v77_v15 }
   0xf   :  { %v69_v25 = vsub.f32 %v67_v21, %v68_v22 }
  0x10   :  { %v85_v32 = vadd.f32 %v84_v27, %v83_v26 }
  0x13   :  { %v87_v35 = vld [vmem:[#allocation2] sm:$0xff] }
  0x14   :  { %v134_v2 = vpop.eup %133 }
  0x15   :  { %v51_v3 = vadd.f32 1.0, %v134_v2 }
  0x17   :  { %135 = vrcp.f32 %v51_v3  ;;  %v63_v7 = vand.u32 2147483648, %v51_v3  ;;  %vm57_vm1 = vweird.f32 %v51_v3  ;;  %v61_v9 = vand.u32 2147483647, %v51_v3 }
  0x19   :  { %v64_v12 = vor.u32 1.1754944e-38, %v63_v7  ;;  %vm62_vm4 = vcmp.eq.f32.partialorder %v61_v9, 8.507059e+37 }
  0x1d   :  { %v136_v5 = vpop.eup %135 }
  0x1e   :  { %v53_v6 = vmul.f32 %v136_v5, %v51_v3  ;;  %vm58_vm2 = vweird.f32 %v136_v5 }
  0x1f   :  { %vm59_vm3 = vmor %vm57_vm1, %vm58_vm2 }
  0x20   :  { %v54_v8 = vsub.f32 1.0, %v53_v6 }
  0x22   :  { %v55_v10 = vmul.f32 %v136_v5, %v54_v8 }
  0x24   :  { %v56_v13 = vadd.f32 %v136_v5, %v55_v10 }
  0x26   :  { %v60_v14 = vsel %vm59_vm3, %v136_v5, %v56_v13 }
  0x27   :  { %v65_v16 = vsel %vm62_vm4, %v64_v12, %v60_v14 }
  0x28   :  { %v71_v17 = vsub.f32 1.0, %v65_v16  ;;  %v76_v18 = vmul.f32 %v65_v16, %v47_v11 }
  0x2a   :  { %v72_v19 = vsel %vm70_vm5, %v65_v16, %v71_v17  ;;  %v78_v20 = vmul.f32 %v77_v15, %v71_v17 }
  0x2b   :  { %137 = vlog2.f32 %v72_v19 }
  0x2c   :  { %v79_v23 = vadd.f32 %v78_v20, %v76_v18 }
  0x2e   :  { %v80_v24 = vsub.f32 1.0, %v79_v23 }
  0x30   :  { %v81_v30 = vmul.f32 %v80_v24, %v80_v24 }
  0x31   :  { %v138_v28 = vpop.eup %137 }
  0x32   :  { %v74_v29 = vmul.f32 0.6931472, %v138_v28 }
  0x34   :  { %v75_v31 = vsub.f32 %v69_v25, %v74_v29 }
  0x36   :  { %v82_v33 = vmul.f32 %v81_v30, %v75_v31 }
  0x38   :  { %v86_v34 = vmul.f32 %v85_v32, %v82_v33 }
  0x3a   :  { %88 = vadd.xlane.f32.xlu0 %v86_v34 }
  0xad   :  { %v89_v36 = vpop.xlane.xlu0 %88 }
  0xae   :  { %v90_v37 = vadd.f32 %v89_v36, %v87_v35 }
  0xb0   :  { %92 = vst.msk [vmem:[#allocation2] sm:$0xff] %vm44_vm0, %v90_v37 }
  0xb7   :  { %v96_v38 = vld [vmem:[#allocation2] sm:$0xff] }
  0xb8   :  { %v97_v39 = vsel %vm44_vm0, %v96_v38, 0.0 }
  0xb9   :  { %98 = vadd.xlane.f32.xlu0 %v97_v39 }
 0x12c   :  { %v99_v40 = vpop.xlane.xlu0 %98 }
 0x12d   :  { %v100_v41 = vrot.slane %v99_v40, 4 }
 0x12f   :  { %v101_v42 = vadd.f32 %v100_v41, %v99_v40 }
 0x131   :  { %v102_v43 = vrot.slane %v101_v42, 2 }
 0x133   :  { %v103_v44 = vadd.f32 %v102_v43, %v101_v42 }
 0x135   :  { %v104_v45 = vrot.slane %v103_v44, 1 }
 0x137   :  { %v105_v46 = vadd.f32 %v104_v45, %v103_v44 }
 0x139   :  { %127 = vpush %v105_v46 }
 0x16a   :  { %s128_s20 = spop %127 }
 0x16b   :  { %108 = sst [smem:[#allocation8]] %s128_s20 }
 0x16c   :  { %117 = dma.smem_to_hbm %s208_s21, 16, %s115_s19, [#allocation5]  }
 0x16d   :  { %203 = dma.done.wait [#allocation5], 16  }
 0x16e   :  { %204 = vsyncadd [#allocation5], 4294967280 }
 0x16f   :  { %122 = sfence }
 0x170   :  { %123 = vsyncpa [#allocation4], 1 }
 0x171   :  { %124 = vsyncpa [#allocation7], 1 }
 0x172   :  { %125 = vsyncpa [#allocation5], 1 }

</bundles_post_ra>
